<compile_context>
chip_gen: v7x
topology: tpu7x:2x2x1
jax: 0.10.0
libtpu: 0.0.40
codegen_flags: <defaults>
</compile_context>

<pallas_src>
import numpy as np
import jax
import jax.numpy as jnp
from jax.experimental import pallas as pl
from jax.experimental.pallas import tpu as pltpu

N_PRIMITIVES = 8
INPUT_CHANNELS = 32
NEG_SLOPE = 0.2


def prim_rotation_kernel(x_ref, wfc_ref, bfc_ref, wrot_ref, brot_ref, grp_ref, out_ref):
    # fc (1x1x1 Conv3d evaluated at (0,0,0)) + LeakyReLU(0.2)
    h = jnp.dot(x_ref[...], wfc_ref[...], preferred_element_type=jnp.float32) + bfc_ref[...]
    h = jnp.where(h > 0, h, NEG_SLOPE * h)
    # rotation layer: [tile_b, C] @ [C, P*4] + bias
    q = jnp.dot(h, wrot_ref[...], preferred_element_type=jnp.float32) + brot_ref[...]
    # per-quaternion |q|^2, lane-parallel, via static block-diagonal grouping matmul
    sumsq = jnp.dot(q * q, grp_ref[...], preferred_element_type=jnp.float32)
    # rsqrt (EUP) + multiply instead of divide; matches torch's q / ||q|| (no eps).
    out_ref[...] = (q * jax.lax.rsqrt(sumsq)).astype(out_ref.dtype)


def _pick_tile_b(B, cap=1024):
    # Keep >= 2 grid steps so v7x's two TensorCores both get work, sublane-align the
    # tile, and cap it (per-row VMEM is ~256 B, so even the cap is tiny).
    if B <= 8:
        return B
    half = pl.cdiv(B, 2)
    return min(cap, pl.cdiv(half, 8) * 8)


def prim_rotation_forward(X, w_fc, b_fc, w_rot, b_rot):
    B, C, D, H, W = X.shape
    P4 = w_rot.shape[1]

    # Wrapper-side strided slice: only the (0,0,0) spatial location feeds the conv
    # outputs that survive the [:, :, 0, 0, 0] selection. Dense [B, C] into the kernel.
    x000 = X[:, :, 0, 0, 0]

    tile_b = _pick_tile_b(B)
    nb = pl.cdiv(B, tile_b)

    # Static (trace-time, NumPy) block-diagonal grouping matrix: column j sums the
    # squared entries of the quaternion containing j.
    grp = (np.arange(P4)[:, None] // 4 == np.arange(P4)[None, :] // 4).astype(np.float32)

    return pl.pallas_call(
        prim_rotation_kernel,
        out_shape=jax.ShapeDtypeStruct((B, P4), jnp.float32),
        grid_spec=pltpu.PrefetchScalarGridSpec(
            num_scalar_prefetch=0,
            grid=(nb,),
            in_specs=[
                pl.BlockSpec((tile_b, C), lambda b: (b, 0)),   # x at (0,0,0)
                pl.BlockSpec((C, C), lambda b: (0, 0)),        # w_fc
                pl.BlockSpec((1, C), lambda b: (0, 0)),        # b_fc
                pl.BlockSpec((C, P4), lambda b: (0, 0)),       # w_rot
                pl.BlockSpec((1, P4), lambda b: (0, 0)),       # b_rot
                pl.BlockSpec((P4, P4), lambda b: (0, 0)),      # quat grouping matrix
            ],
            out_specs=pl.BlockSpec((tile_b, P4), lambda b: (b, 0)),
        ),
        compiler_params=pltpu.CompilerParams(
            dimension_semantics=("parallel",),   # shard batch across v7x's 2 TensorCores
        ),
    )(x000, w_fc, b_fc.reshape(1, -1), w_rot, b_rot.reshape(1, -1), jnp.asarray(grp))


def prim_rotation_ref(X, w_fc, b_fc, w_rot, b_rot, n_primitives):
    # pure-JAX reference mirroring the PyTorch forward
    x = X[:, :, 0, 0, 0]
    h = x @ w_fc + b_fc
    h = jnp.where(h > 0, h, NEG_SLOPE * h)
    q = h @ w_rot + b_rot
    q = q.reshape(-1, n_primitives, 4)
    q = q / jnp.linalg.norm(q, axis=-1, keepdims=True)
    return q.reshape(-1, n_primitives * 4)


if __name__ == "__main__":
    key = jax.random.PRNGKey(0)
    kx, k1, k2, k3, k4 = jax.random.split(key, 5)

    B, C, D, H, W = 16, INPUT_CHANNELS, 4, 4, 4
    P = N_PRIMITIVES

    X = jax.random.normal(kx, (B, C, D, H, W), dtype=jnp.float32)

    # Conv3d(C, C, 1) / Conv3d(C, P*4, 1) weights stored as [in, out] matmul matrices
    # (real Conv3d checkpoints store [out, in, 1, 1, 1]; caller must transpose/squeeze).
    w_fc = jax.random.normal(k1, (C, C), dtype=jnp.float32) * 0.1
    b_fc = jax.random.normal(k2, (C,), dtype=jnp.float32) * 0.1
    w_rot = jax.random.normal(k3, (C, P * 4), dtype=jnp.float32) * 0.1
    b_rot = jax.random.normal(k4, (P * 4,), dtype=jnp.float32) * 0.1

    fwd = jax.jit(prim_rotation_forward)
    out = jax.block_until_ready(fwd(X, w_fc, b_fc, w_rot, b_rot))

    ref = prim_rotation_ref(X, w_fc, b_fc, w_rot, b_rot, P)
    assert out.shape == (B, P * 4), out.shape
    max_err = float(jnp.max(jnp.abs(out - ref)))
    assert jnp.allclose(out, ref, atol=1e-5, rtol=1e-5), max_err
    print("KERNEL_OK")
</pallas_src>

<mosaic_0001>
module attributes {stable_mosaic.version = 11 : i64} {
  func.func @prim_rotation_kernel(%arg0: i32, %arg1: memref<8x32xf32, #tpu.memory_space<vmem>>, %arg2: memref<32x32xf32, #tpu.memory_space<vmem>>, %arg3: memref<1x32xf32, #tpu.memory_space<vmem>>, %arg4: memref<32x32xf32, #tpu.memory_space<vmem>>, %arg5: memref<1x32xf32, #tpu.memory_space<vmem>>, %arg6: memref<32x32xf32, #tpu.memory_space<vmem>>, %arg7: memref<8x32xf32, #tpu.memory_space<vmem>>) attributes {dimension_semantics = [#tpu.dimension_semantics<parallel>], iteration_bounds = array<i64: 2>, scalar_prefetch = 0 : i64, scratch_operands = 0 : i64, tpu.core_type = #tpu.core_type<tc>, window_params = [{transform_indices = @transform_0, window_bounds = array<i64: 8, 32>}, {pipeline_mode = #tpu.pipeline_mode<synchronous>, transform_indices = @transform_1, window_bounds = array<i64: 32, 32>}, {pipeline_mode = #tpu.pipeline_mode<synchronous>, transform_indices = @transform_2, window_bounds = array<i64: 1, 32>}, {pipeline_mode = #tpu.pipeline_mode<synchronous>, transform_indices = @transform_3, window_bounds = array<i64: 32, 32>}, {pipeline_mode = #tpu.pipeline_mode<synchronous>, transform_indices = @transform_4, window_bounds = array<i64: 1, 32>}, {pipeline_mode = #tpu.pipeline_mode<synchronous>, transform_indices = @transform_5, window_bounds = array<i64: 32, 32>}, {transform_indices = @transform_6, window_bounds = array<i64: 8, 32>}]} {
    %c0 = arith.constant 0 : index
    %c0_0 = arith.constant 0 : index
    %0 = vector.load %arg1[%c0, %c0_0] : memref<8x32xf32, #tpu.memory_space<vmem>>, vector<8x32xf32>
    %c0_1 = arith.constant 0 : index
    %c0_2 = arith.constant 0 : index
    %1 = vector.load %arg2[%c0_1, %c0_2] : memref<32x32xf32, #tpu.memory_space<vmem>>, vector<32x32xf32>
    %cst = arith.constant dense<0.000000e+00> : vector<8x32xf32>
    %2 = tpu.matmul %0, %1, %cst {dimension_numbers = #tpu.dot_dimension_numbers<[1], [0], [0], [1], [0, 0, 1, 1], [], []>} : vector<8x32xf32>, vector<32x32xf32>, vector<8x32xf32> -> vector<8x32xf32>
    %c0_3 = arith.constant 0 : index
    %c0_4 = arith.constant 0 : index
    %3 = vector.load %arg3[%c0_3, %c0_4] : memref<1x32xf32, #tpu.memory_space<vmem>>, vector<1x32xf32>
    %4 = vector.broadcast %3 : vector<1x32xf32> to vector<8x32xf32>
    %5 = arith.addf %2, %4 : vector<8x32xf32>
    %cst_5 = arith.constant 0.000000e+00 : f32
    %6 = vector.broadcast %cst_5 : f32 to vector<8x32xf32>
    %7 = arith.cmpf ogt, %5, %6 : vector<8x32xf32>
    %cst_6 = arith.constant 2.000000e-01 : f32
    %8 = vector.broadcast %cst_6 : f32 to vector<8x32xf32>
    %9 = arith.mulf %8, %5 : vector<8x32xf32>
    %10 = arith.select %7, %5, %9 : vector<8x32xi1>, vector<8x32xf32>
    %c0_7 = arith.constant 0 : index
    %c0_8 = arith.constant 0 : index
    %11 = vector.load %arg4[%c0_7, %c0_8] : memref<32x32xf32, #tpu.memory_space<vmem>>, vector<32x32xf32>
    %cst_9 = arith.constant dense<0.000000e+00> : vector<8x32xf32>
    %12 = tpu.matmul %10, %11, %cst_9 {dimension_numbers = #tpu.dot_dimension_numbers<[1], [0], [0], [1], [0, 0, 1, 1], [], []>} : vector<8x32xf32>, vector<32x32xf32>, vector<8x32xf32> -> vector<8x32xf32>
    %c0_10 = arith.constant 0 : index
    %c0_11 = arith.constant 0 : index
    %13 = vector.load %arg5[%c0_10, %c0_11] : memref<1x32xf32, #tpu.memory_space<vmem>>, vector<1x32xf32>
    %14 = vector.broadcast %13 : vector<1x32xf32> to vector<8x32xf32>
    %15 = arith.addf %12, %14 : vector<8x32xf32>
    %16 = arith.mulf %15, %15 : vector<8x32xf32>
    %c0_12 = arith.constant 0 : index
    %c0_13 = arith.constant 0 : index
    %17 = vector.load %arg6[%c0_12, %c0_13] : memref<32x32xf32, #tpu.memory_space<vmem>>, vector<32x32xf32>
    %cst_14 = arith.constant dense<0.000000e+00> : vector<8x32xf32>
    %18 = tpu.matmul %16, %17, %cst_14 {dimension_numbers = #tpu.dot_dimension_numbers<[1], [0], [0], [1], [0, 0, 1, 1], [], []>} : vector<8x32xf32>, vector<32x32xf32>, vector<8x32xf32> -> vector<8x32xf32>
    %19 = math.rsqrt %18 : vector<8x32xf32>
    %20 = arith.mulf %15, %19 : vector<8x32xf32>
    %c0_15 = arith.constant 0 : index
    %c0_16 = arith.constant 0 : index
    %21 = vector.load %arg7[%c0_15, %c0_16] : memref<8x32xf32, #tpu.memory_space<vmem>>, vector<8x32xf32>
    tpu.vector_store %arg7[%c0_15, %c0_16], %20 {strides = array<i32>} : memref<8x32xf32, #tpu.memory_space<vmem>>, vector<8x32xf32>,
    return
  }
  func.func @transform_0(%arg0: i32) -> (i32, i32) {
    %c0_i32 = arith.constant 0 : i32
    %c0_i32_0 = arith.constant 0 : i32
    return %arg0, %c0_i32 : i32, i32
  }
  func.func @transform_1(%arg0: i32) -> (i32, i32) {
    %c0_i32 = arith.constant 0 : i32
    %c0_i32_0 = arith.constant 0 : i32
    %c0_i32_1 = arith.constant 0 : i32
    return %c0_i32, %c0_i32_0 : i32, i32
  }
  func.func @transform_2(%arg0: i32) -> (i32, i32) {
    %c0_i32 = arith.constant 0 : i32
    %c0_i32_0 = arith.constant 0 : i32
    %c0_i32_1 = arith.constant 0 : i32
    return %c0_i32, %c0_i32_0 : i32, i32
  }
  func.func @transform_3(%arg0: i32) -> (i32, i32) {
    %c0_i32 = arith.constant 0 : i32
    %c0_i32_0 = arith.constant 0 : i32
    %c0_i32_1 = arith.constant 0 : i32
    return %c0_i32, %c0_i32_0 : i32, i32
  }
  func.func @transform_4(%arg0: i32) -> (i32, i32) {
    %c0_i32 = arith.constant 0 : i32
    %c0_i32_0 = arith.constant 0 : i32
    %c0_i32_1 = arith.constant 0 : i32
    return %c0_i32, %c0_i32_0 : i32, i32
  }
  func.func @transform_5(%arg0: i32) -> (i32, i32) {
    %c0_i32 = arith.constant 0 : i32
    %c0_i32_0 = arith.constant 0 : i32
    %c0_i32_1 = arith.constant 0 : i32
    return %c0_i32, %c0_i32_0 : i32, i32
  }
  func.func @transform_6(%arg0: i32) -> (i32, i32) {
    %c0_i32 = arith.constant 0 : i32
    %c0_i32_0 = arith.constant 0 : i32
    return %arg0, %c0_i32 : i32, i32
  }
}

</mosaic_0001>

<bundles_post_ra>
// kernel: prim_rotation_forward.1
= control target key start
LH: loop header
LB: loop body
LE: loop exit
PB: predicated region body
PF: predicated region fallthrough
CT: control target
= control target key end

     0   :  { %11 = vsyncpa [#allocation3], 0  ;;  %s1146_s0 = inlined_call_operand.vmem [shape: f32[16,32], index: 0, kind: input, shape index: {}]   ;;  %s1147_s1 = inlined_call_operand.vmem [shape: f32[32,32], index: 1, kind: input, shape index: {}]   ;;  %s1148_s2 = inlined_call_operand.vmem [shape: f32[1,32], index: 2, kind: input, shape index: {}]   ;;  %s1149_s3 = inlined_call_operand.hbm [shape: f32[32,32], index: 3, kind: input, shape index: {}]   ;;  %s1150_s4 = inlined_call_operand.vmem [shape: f32[1,32], index: 4, kind: input, shape index: {}]   ;;  %s1151_s5 = inlined_call_operand.hbm [shape: f32[32,32], index: 5, kind: input, shape index: {}]   ;;  %s1152_s6 = inlined_call_operand.hbm [shape: f32[16,32], index: 6, kind: output, shape index: {}]  }
   0x1   :  { %12 = vsyncpa [#allocation6], 0 }
   0x2   :  { %13 = vsyncpa [#allocation4], 0 }
   0x3   :  { %15 = vsyncpa [#allocation4 + $0x1], 0  ;;  %s949_s21 = smov 0   ;;  %s951_s22 = smov 0  }
   0x4   :  { %s953_s23 = smov 0   ;;  %s955_s24 = smov 0  }
   0x5 LB: > { %s970_s25 = sadd.s32 4294967295, %s904_s24   ;;  %s626_s26 = sadd.s32 4294967294, %s904_s24   ;;  %s904_s24 = sphi %s955_s24, %s1170_s24   ;;  %s900_s23 = sphi %s953_s23, %s1169_s23   ;;  %s896_s22 = sphi %s951_s22, %s1168_s22   ;;  %s892_s21 = sphi %s949_s21, %s1167_s21  }
   0x6   : > { %s974_s27 = sadd.s32 1, %s904_s24   ;;  %s159_s28 = sadd.s32 1, %s900_s23 }
   0x7   : > { %s156_s29 = ssub.s32 %s904_s24, %s974_s27  ;;  %p169_p0 = scmp.ne.s32.totalorder %s900_s23, %s896_s22 }
   0x8   : > { %p157_p1 = scmp.eq.s32.totalorder %s156_s29, 0  ;;  %p170_p2 = scmp.eq.s32.totalorder %s970_s25, 1 }
   0x9   : > { %p175_p3 = scmp.ne.s32.totalorder %s896_s22, %s892_s21  ;;  %p176_p4 = scmp.eq.s32.totalorder %s626_s26, 1 }
   0xa   : > { %s985_s30 = scalar_select %p157_p1, %s900_s23, %s159_s28  }
   0xb   : > { %p987_p5 = por %p170_p2, %p169_p0  ;;  %p991_p6 = por %p176_p4, %p175_p3 }
   0xc   : > { %p627_p7 = scmp.ge.s32.totalorder %s904_s24, 1  ;;  %p183_p8 = scmp.lt.s32.totalorder %s904_s24, 3 }
   0xd   : > { %s1156_s7 = scalar_select %p987_p5, 1, 0 }
   0xe   : > { %s1157_s8 = scalar_select %p991_p6, 1, 0 }
   0xf   : > { %p1153_p9 = scmp.eq.s32.totalorder %s970_s25, 0  ;;  %p998_p10 = pnand %p627_p7, %p183_p8 }
  0x10   : > { %s906_s10 = smov [#allocation2]   ;;  %s907_s13 = smov [#allocation5]  }
  0x11   : > { %s1158_s9 = scalar_select %p998_p10, 1, 0 }
  0x12   : > { %s201_s11 = sshll.u32 %s906_s10, 4  ;;  %p721_p11 = pneg %p998_p10  ;;  %s202_s11 = int_to_ptr.vmem [resolvable:$true] %s201_s11 }
  0x13   : > { %s217_s14 = sshll.u32 %s907_s13, 4  ;;  %s778_s17 = scalar_lea.hbm %s1149_s3, 512  ;;  %s1010_s14 = int_to_ptr.vmem [resolvable:$true] %s217_s14 }
  0x14   : > { %p1006_p12 = pnand %p1153_p9, %p721_p11  ;;  %p779_p13 = scmp.ne.s32.totalorder %s1149_s3, %s778_s17 }
  0x15   : > { %p785_p3 = scmp.lt.u32.totalorder %s778_s17, %s1149_s3 }
  0x16   : > { %p780_p0 = pneg %p1006_p12 }
  0x18   : > { %p781_p1 = pnand %p780_p0, %p779_p13 }
  0x1a   : > { %p782_p2 = pneg %p781_p1 }
  0x1c   : > { %p787_p4 = pnand %p785_p3, %p782_p2 }
  0x1e   : > { %790 = shalt.err (!%p787_p4)
}
  0x1f   : > { %s791_s28 = scalar_lea.vmem %s202_s11, 512  ;;  %p799_p9 = scmp.lt.s32.totalorder %s202_s11, %s202_s11 }
  0x20   : > { %p792_p7 = scmp.ne.s32.totalorder %s202_s11, %s791_s28  ;;  %p800_p6 = scmp.lt.s32.totalorder %s791_s28, %s791_s28 }
  0x22   : > { %p794_p8 = pnand %p792_p7, %p780_p0  ;;  %p801_p5 = por %p800_p6, %p799_p9 }
  0x24   : > { %p795_p11 = pneg %p794_p8 }
  0x26   : > { %p802_p10 = pnand %p801_p5, %p795_p11 }
  0x28   : > { %805 = shalt.err (!%p802_p10)
}
  0x29   : > { %s908_s29 = smov 128   ;;  %s909_s10 = smov 8  }
  0x2a   : > { %724 = dma.hbm_to_vmem [thread:$0]  (!%p1006_p12), %s1149_s3, 512, %s202_s11, [#allocation3], %s908_s29, %s908_s29, %s909_s10  }
  0x2b   : > { %s806_s18 = scalar_lea.hbm %s1151_s5, 512 }
  0x2c   : > { %p807_p13 = scmp.ne.s32.totalorder %s1151_s5, %s806_s18  ;;  %p813_p9 = scmp.lt.u32.totalorder %s806_s18, %s1151_s5 }
  0x2e   : > { %p809_p5 = pnand %p807_p13, %p780_p0 }
  0x30   : > { %p810_p6 = pneg %p809_p5 }
  0x32   : > { %p815_p10 = pnand %p813_p9, %p810_p6 }
  0x34   : > { %818 = shalt.err (!%p815_p10)
}
  0x35   : > { %s819_s11 = scalar_lea.vmem %s1010_s14, 512  ;;  %p827_p4 = scmp.lt.s32.totalorder %s1010_s14, %s1010_s14 }
  0x36   : > { %p820_p1 = scmp.ne.s32.totalorder %s1010_s14, %s819_s11  ;;  %p828_p7 = scmp.lt.s32.totalorder %s819_s11, %s819_s11 }
  0x38   : > { %p822_p2 = pnand %p820_p1, %p780_p0  ;;  %p829_p8 = por %p828_p7, %p827_p4 }
  0x3a   : > { %p823_p3 = pneg %p822_p2 }
  0x3c   : > { %p830_p11 = pnand %p829_p8, %p823_p3 }
  0x3e   : > { %833 = shalt.err (!%p830_p11)
}
  0x3f   : > { %727 = dma.hbm_to_vmem [thread:$0]  (!%p1006_p12), %s1151_s5, 512, %s1010_s14, [#allocation6], %s908_s29, %s908_s29, %s909_s10  }
  0x40   : > { %p1160_p13 = scmp.ne.s32.totalorder %s1158_s9, 0 }
  0x41   : > { %p1161_p5 = scmp.eq.s32.totalorder (!%p1160_p13), %s970_s25, 0 }
  0x42   : > { %240 = sbr.rel (%p1160_p13) target bundleno = 761 (0x2f9), region = 44 }
  0x49   : > { %879 = dma.done.wait (%p1161_p5), [#allocation3], 512   ;;  %p1162_p0 = pmov %p1161_p5 }
  0x4b   : > { %881 = vsyncadd (%p1162_p0), [#allocation3], 4294966784  ;;  %p1163_p6 = pmov %p1162_p0 }
  0x4c   : > { %p1164_p9 = pmov %p1162_p0 }
  0x4d   : > { %883 = dma.done.wait (%p1163_p6), [#allocation6], 512  }
  0x4e   : > { %885 = vsyncadd (%p1164_p9), [#allocation6], 4294966784  ;;  %p273_p10 = scmp.lt.s32.totalorder %s970_s25, 1  ;;  %v910_v0 = vmov 0.0|0.0   ;;  %vm911_vm0 = vmmov 0   ;;  %v912_v1 = vmov 0.0  }
  0x4f   : > { %693 = vmatprep.subr.bf16.mxu0 %v910_v0  ;;  %668 = vmatprep.mubr.msk.f32.mxu0 %vm911_vm0, %v912_v1  ;;  %v278_v2 = vld [vmem:[%s1147_s1] sm:$0xff]  ;;  %v279_v3 = vld [vmem:[%s1147_s1 + $0x8] sm:$0xff]  ;;  %v280_v4 = vld [vmem:[%s1147_s1 + $0x10] sm:$0xff]  ;;  %vm289_vm1 = vcmask 261120   ;;  %s270_s14 = sand.u32 1, %s896_s22   ;;  %s642_s10 = sshll.u32 %s970_s25, 7 }
  0x50   : > { %699 = vmatprep.subr.bf16.mxu1 %v910_v0  ;;  %679 = vmatprep.mubr.msk.f32.mxu1 %vm911_vm0, %v912_v1  ;;  %s274_s9 = scalar_select %p273_p10, %s970_s25, 1  ;;  %v694_v5 = vpack.c.bf16 %v279_v3, %v278_v2  ;;  %v281_v6 = vld [vmem:[%s1147_s1 + $0x18] sm:$0xff]  ;;  %v366_v7 = vld [vmem:[#allocation2] sm:$0xff]  ;;  %v367_v8 = vld [vmem:[#allocation2 + $0x8] sm:$0xff] }
  0x51   : > { %v697_v9 = vpack.c.bf16 %v281_v6, %v280_v4  ;;  %v700_v10 = vpack.c.bf16 %v367_v8, %v366_v7  ;;  %v368_v12 = vld [vmem:[#allocation2 + $0x10] sm:$0xff]  ;;  %v369_v13 = vld [vmem:[#allocation2 + $0x18] sm:$0xff]  ;;  %v451_v15 = vld [vmem:[#allocation5] sm:$0xff]  ;;  %s634_s29 = sshll.u32 %s270_s14, 3  ;;  %s532_s26 = scalar_lea.sflag [#allocation4], %s270_s14 }
  0x52   : > { %s635_s20 = sshll.u32 %s274_s9, 3  ;;  %695 = vmatpush3.bf16.msra.mxu0 %v694_v5  ;;  %v703_v14 = vpack.c.bf16 %v369_v13, %v368_v12  ;;  %v452_v16 = vld [vmem:[#allocation5 + $0x8] sm:$0xff]  ;;  %v636_v18 = vld [vmem:[%s1148_s2] ss:$0 sm:$0xff]  ;;  %v453_v24 = vld [vmem:[#allocation5 + $0x10] sm:$0xff]  ;;  %s272_s16 = scalar_lea.vmem [#allocation7], %s634_s29 }
  0x53   : > { %696 = vmatprep.subr.bf16.mxu0 %v910_v0  ;;  %s276_s11 = scalar_lea.vmem %s1146_s0, %s635_s20  ;;  %701 = vmatpush3.bf16.msra.mxu1 %v700_v10  ;;  %v706_v17 = vpack.c.bf16 %v452_v16, %v451_v15  ;;  %v454_v25 = vld [vmem:[#allocation5 + $0x18] sm:$0xff]  ;;  %v638_v27 = vld [vmem:[%s1150_s4] ss:$0 sm:$0xff]  ;;  %s545_s17 = sshll.u32 %s272_s16, 4  ;;  %s1105_s17 = int_to_ptr.vmem [resolvable:$true] %s545_s17 }
  0x54   : > { %702 = vmatprep.subr.bf16.mxu1 %v910_v0  ;;  %v277_v11 = vld [vmem:[%s276_s11] sm:$0xff]  ;;  %v709_v26 = vpack.c.bf16 %v454_v25, %v453_v24  ;;  %s1103_s20 = scalar_lea.hbm %s1152_s6, %s642_s10  ;;  %s834_s28 = scalar_lea.vmem %s1105_s17, 128 }
  0x55   : > { %p835_p12 = scmp.ne.s32.totalorder %s1105_s17, %s834_s28  ;;  %p1165_p1 = scmp.ne.s32.totalorder %s1156_s7, 0 }
  0x56   : > { %698 = vmatpush3.bf16.msra.mxu0 %v697_v9  ;;  %s913_s25 = smov [#allocation7]  }
  0x57   : > { %705 = vmatprep.subr.bf16.mxu0 %v910_v0  ;;  %704 = vmatpush3.bf16.msra.mxu1 %v703_v14  ;;  %p836_p2 = pnand %p835_p12, %p1165_p1  ;;  %s838_s11 = sshll.u32 %s913_s25, 4  ;;  %s839_s11 = int_to_ptr.vmem [resolvable:$false] %s838_s11 }
  0x58   : > { %s840_s13 = scalar_lea.vmem %s839_s11, 256  ;;  %p841_p4 = scmp.lt.s32.totalorder %s1105_s17, %s839_s11 }
  0x59   : > { %669 = vmatmul.mubr.msk.f32.vlgmr.msra.gmra.mrb[0].mxu0 %vm289_vm1, %v277_v11  ;;  %p837_p3 = pneg %p836_p2  ;;  %p842_p7 = scmp.lt.s32.totalorder %s840_s13, %s834_s28 }
  0x5a   : > { %690 = vmatprep.mubr.msk.f32.mxu0 %vm911_vm0, %v912_v1  ;;  %707 = vmatpush3.bf16.msra.mxu0 %v706_v17 }
  0x5b   : > { %708 = vmatprep.subr.bf16.mxu0 %v910_v0  ;;  %p843_p8 = por %p842_p7, %p841_p4 }
  0x5d   : > { %p844_p11 = pnand %p843_p8, %p837_p3 }
  0x5e   : > { %710 = vmatpush3.bf16.msra.mxu0 %v709_v26 }
 0x12c   : > { %v359_v19 = vpop.f32.mrb[0].mxu0 }
 0x12d   : > { %v360_v20 = vadd.f32 %v636_v18, %v359_v19  ;;  %v670_v21 = vpop.f32.mrb[1].mxu0 }
 0x12f   : > { %vm363_vm2 = vcmp.gt.f32.partialorder %v360_v20, 0.0  ;;  %v364_v22 = vmul.f32 0.2, %v360_v20 }
 0x131   : > { %v365_v23 = vsel %vm363_vm2, %v360_v20, %v364_v22 }
 0x132   : > { %680 = vmatmul.mubr.msk.f32.vlgmr.msra.gmra.mrb[0].mxu1 %vm289_vm1, %v365_v23 }
 0x205   : > { %v446_v28 = vpop.f32.mrb[0].mxu1 }
 0x206   : > { %v447_v29 = vadd.f32 %v638_v27, %v446_v28  ;;  %v681_v30 = vpop.f32.mrb[1].mxu1 }
 0x208   : > { %v450_v31 = vmul.f32 %v447_v29, %v447_v29 }
 0x20a   : > { %691 = vmatmul.mubr.msk.f32.vlgmr.msra.gmra.mrb[2].mxu0 %vm289_vm1, %v450_v31 }
 0x2dd   : > { %v524_v32 = vpop.f32.mrb[2].mxu0 }
 0x2de   : > { %776 = vrsqrt.f32 %v524_v32  ;;  %v692_v33 = vpop.f32.mrb[3].mxu0 }
 0x2e8   : > { %v777_v34 = vpop.eup %776 }
 0x2e9   : > { %v529_v35 = vmul.f32 %v777_v34, %v447_v29 }
 0x2eb   : > { %530 = vst.msk [vmem:[%s272_s16] sm:$0xff] %vm289_vm1, %v529_v35 }
 0x2ec   : > { %847 = shalt.err (!%p844_p11)
}
 0x2ed   : > { %s848_s15 = scalar_lea.hbm %s1103_s20, 128  ;;  %s852_s14 = scalar_lea.hbm %s1152_s6, 256 }
 0x2ee   : > { %p849_p13 = scmp.ne.s32.totalorder %s1103_s20, %s848_s15  ;;  %p853_p6 = scmp.lt.u32.totalorder %s1103_s20, %s1152_s6 }
 0x2ef   : > { %p854_p9 = scmp.lt.u32.totalorder %s852_s14, %s848_s15  ;;  %p856_p12 = scmp.lt.u32.totalorder %s848_s15, %s1103_s20 }
 0x2f0   : > { %p850_p5 = pnand %p849_p13, %p1165_p1 }
 0x2f1   : > { %p855_p10 = por %p854_p9, %p853_p6 }
 0x2f2   : > { %p851_p0 = pneg %p850_p5 }
 0x2f3   : > { %p857_p2 = por %p856_p12, %p855_p10 }
 0x2f5   : > { %p858_p3 = pnand %p857_p2, %p851_p0 }
 0x2f7   : > { %861 = shalt.err (!%p858_p3)
}
 0x2f8   : > { %719 = dma.vmem_to_hbm [thread:$0]  (%p1165_p1), %s1105_s17, 128, %s1103_s20, %s532_s26  }
 0x2f9 PF: > { %p736_p4 = scmp.ge.s32.totalorder %s904_s24, 2  ;;  %s557_s16 = sand.u32 1, %s892_s21  }
 0x2fa   : > { %p1166_p7 = scmp.ne.s32.totalorder %s1157_s8, 0  ;;  %s558_s18 = scalar_lea.sflag [#allocation4], %s557_s16 }
 0x2fc   : > { %p729_p8 = pnand %p736_p4, %p1166_p7 }
 0x2fe   : > { %887 = dma.done.wait (!%p729_p8), %s558_s18, 128  }
 0x2ff   : > { %889 = vsyncadd (!%p729_p8), %s558_s18, 4294967168  ;;  %p18_p11 = scmp.ge.s32.totalorder %s974_s27, 4   ;;  %s1167_s21 = smov %s896_s22 }
 0x300   : > { %s1168_s22 = smov %s900_s23  ;;  %s1169_s23 = smov %s985_s30 }
 0x301   : > { %s1170_s24 = smov %s974_s27  ;;  %20 = sbr.rel (!%p18_p11) target bundleno = 5 (0x5), region = 88 }
 0x308   :  { %563 = vsyncpa [#allocation3], 1 }
 0x309   :  { %565 = vsyncpa [#allocation3 + $0x1], 1 }
 0x30a   :  { %566 = vsyncpa [#allocation6], 1 }
 0x30b   :  { %567 = vsyncpa [#allocation4], 1 }
 0x30c   :  { %569 = vsyncpa [#allocation4 + $0x1], 1 }

</bundles_post_ra>
